<compile_context>
chip_gen: v6e
topology: v6e:2x2x1
jax: 0.10.0
libtpu: 0.0.40
codegen_flags: <defaults>
</compile_context>

<pallas_src>
import jax
import jax.numpy as jnp
from jax.experimental import pallas as pl
from jax.experimental.pallas import tpu as pltpu


def _round_up(x: int, m: int) -> int:
    return ((x + m - 1) // m) * m


def _tensorcores_per_chip() -> int:
    """1 TensorCore/chip on v5e/v6e, 2 on v7x (shard the 'parallel' axis)."""
    try:
        kind = jax.devices()[0].device_kind.lower()
    except Exception:
        return 1
    return 2 if ("v7" in kind or "7x" in kind) else 1


def mlp_kernel(x_ref, w1_ref, b1_ref, w2_ref, b2_ref, o_ref):
    # fc1: cast x to bf16 on the fly (no padded HBM copy), MXU matmul with
    # f32 accumulation, bias + ReLU on the VPU.
    x = x_ref[...].astype(w1_ref.dtype)                       # (tb, F) bf16
    h = jnp.dot(x, w1_ref[...], preferred_element_type=jnp.float32)
    h = jnp.maximum(h + b1_ref[...], 0.0)                     # (tb, Hp) + (1, Hp)
    # fc2: MXU matmul, bias add, lane-dense (128-wide) unmasked store.
    y = jnp.dot(h.astype(w2_ref.dtype), w2_ref[...],
                preferred_element_type=jnp.float32)
    o_ref[...] = (y + b2_ref[...]).astype(o_ref.dtype)        # (tb, Cp) + (1, Cp)


def make_mlp_forward(w1, b1, w2, b2, *, compute_dtype=jnp.bfloat16,
                     max_tile=1024):
    """One-time parameter prep + a jitted fused forward pass.

    w1: (F, H), b1: (H,) or (1, H), w2: (H, C), b2: (C,) or (1, C).
    Returns forward(x) computing relu(x @ w1 + b1) @ w2 + b2.
    """
    F, H = w1.shape
    C = w2.shape[1]
    Hp = _round_up(H, 128)     # 32 -> 128 (lane-dense hidden)
    Cp = _round_up(C, 128)     # 10 -> 128 (unmasked vst on the output)

    b1 = jnp.asarray(b1).reshape(1, -1)
    b2 = jnp.asarray(b2).reshape(1, -1)
    # Zero-padded hidden/class columns contribute exactly 0 to real outputs.
    # Done ONCE here (hoisted out of the per-call path).
    w1p = jnp.zeros((F, Hp), compute_dtype).at[:, :H].set(w1.astype(compute_dtype))
    b1p = jnp.zeros((1, Hp), jnp.float32).at[:, :H].set(b1.astype(jnp.float32))
    w2p = jnp.zeros((Hp, Cp), compute_dtype).at[:H, :C].set(w2.astype(compute_dtype))
    b2p = jnp.zeros((1, Cp), jnp.float32).at[:, :C].set(b2.astype(jnp.float32))
    w1p, b1p, w2p, b2p = jax.block_until_ready((w1p, b1p, w2p, b2p))

    num_tc = _tensorcores_per_chip()

    @jax.jit
    def forward(x):
        B = x.shape[0]
        # Grid sizing: a single step on single-TC chips (v5e/v6e); two
        # balanced 'parallel' steps on v7x so both TensorCores get work.
        # Cap the tile so large batches stay well inside VMEM (a tb=1024 step
        # is ~<8 MB including double buffering, fine even on v7x's 64 MiB).
        steps = num_tc if (num_tc > 1 and B > 8) else 1
        tb = _round_up(-(-B // steps), 8)
        tb = max(8, min(tb, max_tile))
        Bp = _round_up(B, tb)
        # Batch-only zero pad (fused under jit; usually a no-op). Padded rows
        # produce relu(b1)@W2+b2 garbage that is sliced off below.
        xp = x if Bp == B else jnp.pad(x, ((0, Bp - B), (0, 0)))

        flops = 2 * Bp * F * Hp + 2 * Bp * Hp * Cp
        bytes_accessed = (Bp * F * x.dtype.itemsize
                          + w1p.size * w1p.dtype.itemsize
                          + w2p.size * w2p.dtype.itemsize
                          + (b1p.size + b2p.size) * 4
                          + Bp * Cp * 4)

        out = pl.pallas_call(
            mlp_kernel,
            out_shape=jax.ShapeDtypeStruct((Bp, Cp), jnp.float32),
            grid_spec=pltpu.PrefetchScalarGridSpec(
                num_scalar_prefetch=0,
                grid=(Bp // tb,),
                in_specs=[
                    # x tiled over batch; full-extent (unpadded) feature dim.
                    pl.BlockSpec((tb, F), lambda i: (i, 0)),
                    # Weights/biases: constant index_maps -> VMEM-resident.
                    pl.BlockSpec((F, Hp), lambda i: (0, 0)),
                    pl.BlockSpec((1, Hp), lambda i: (0, 0)),
                    pl.BlockSpec((Hp, Cp), lambda i: (0, 0)),
                    pl.BlockSpec((1, Cp), lambda i: (0, 0)),
                ],
                out_specs=pl.BlockSpec((tb, Cp), lambda i: (i, 0)),
            ),
            compiler_params=pltpu.CompilerParams(
                dimension_semantics=("parallel",)),
            cost_estimate=pl.CostEstimate(
                flops=flops, transcendentals=0,
                bytes_accessed=bytes_accessed),
        )(xp, w1p, b1p, w2p, b2p)

        # Strip batch / class padding (fuses with the call under jit).
        return out[:B, :C].astype(x.dtype)

    return forward


if __name__ == "__main__":
    num_features = 28 * 28
    hidden_size = 32
    num_classes = 10
    batch = 32                       # small demo batch

    key = jax.random.PRNGKey(0)
    kx, kw1, kb1, kw2, kb2 = jax.random.split(key, 5)

    # Deterministic synthetic parameters, stored as (in_features, out_features)
    # so the kernel computes x @ W directly (same math as torch.nn.Linear).
    x = jax.random.normal(kx, (batch, num_features), dtype=jnp.float32)
    w1 = jax.random.normal(kw1, (num_features, hidden_size), jnp.float32) * 0.02
    b1 = jax.random.normal(kb1, (hidden_size,), jnp.float32) * 0.01
    w2 = jax.random.normal(kw2, (hidden_size, num_classes), jnp.float32) * 0.02
    b2 = jax.random.normal(kb2, (num_classes,), jnp.float32) * 0.01

    forward = make_mlp_forward(w1, b1, w2, b2)   # one-time weight prep
    out = jax.block_until_ready(forward(x))

    # Pure-JAX f32 reference. The kernel runs the matmuls in bf16 with f32
    # accumulation, so compare with a correspondingly loosened tolerance.
    ref = jnp.maximum(x @ w1 + b1[None, :], 0.0) @ w2 + b2[None, :]
    assert out.shape == (batch, num_classes)
    assert jnp.allclose(out, ref, atol=3e-2, rtol=3e-2), \
        float(jnp.max(jnp.abs(out - ref)))

    print("KERNEL_OK")
</pallas_src>

<mosaic_0001>
module attributes {stable_mosaic.version = 11 : i64} {
  func.func @mlp_kernel(%arg0: i32, %arg1: memref<32x784xf32, #tpu.memory_space<vmem>>, %arg2: memref<784x128xbf16, #tpu.memory_space<vmem>>, %arg3: memref<1x128xf32, #tpu.memory_space<vmem>>, %arg4: memref<128x128xbf16, #tpu.memory_space<vmem>>, %arg5: memref<1x128xf32, #tpu.memory_space<vmem>>, %arg6: memref<32x128xf32, #tpu.memory_space<vmem>>) attributes {dimension_semantics = [#tpu.dimension_semantics<parallel>], iteration_bounds = array<i64: 1>, scalar_prefetch = 0 : i64, scratch_operands = 0 : i64, tpu.core_type = #tpu.core_type<tc>, window_params = [{transform_indices = @transform_0, window_bounds = array<i64: 32, 784>}, {pipeline_mode = #tpu.pipeline_mode<synchronous>, transform_indices = @transform_1, window_bounds = array<i64: 784, 128>}, {pipeline_mode = #tpu.pipeline_mode<synchronous>, transform_indices = @transform_2, window_bounds = array<i64: 1, 128>}, {pipeline_mode = #tpu.pipeline_mode<synchronous>, transform_indices = @transform_3, window_bounds = array<i64: 128, 128>}, {pipeline_mode = #tpu.pipeline_mode<synchronous>, transform_indices = @transform_4, window_bounds = array<i64: 1, 128>}, {transform_indices = @transform_5, window_bounds = array<i64: 32, 128>}]} {
    %c0 = arith.constant 0 : index
    %c0_0 = arith.constant 0 : index
    %0 = vector.load %arg1[%c0, %c0_0] : memref<32x784xf32, #tpu.memory_space<vmem>>, vector<32x784xf32>
    %1 = arith.truncf %0 : vector<32x784xf32> to vector<32x784xbf16>
    %c0_1 = arith.constant 0 : index
    %c0_2 = arith.constant 0 : index
    %2 = vector.load %arg2[%c0_1, %c0_2] : memref<784x128xbf16, #tpu.memory_space<vmem>>, vector<784x128xbf16>
    %cst = arith.constant dense<0.000000e+00> : vector<32x128xf32>
    %3 = tpu.matmul %1, %2, %cst {dimension_numbers = #tpu.dot_dimension_numbers<[1], [0], [0], [1], [0, 0, 1, 1], [], []>} : vector<32x784xbf16>, vector<784x128xbf16>, vector<32x128xf32> -> vector<32x128xf32>
    %c0_3 = arith.constant 0 : index
    %c0_4 = arith.constant 0 : index
    %4 = vector.load %arg3[%c0_3, %c0_4] : memref<1x128xf32, #tpu.memory_space<vmem>>, vector<1x128xf32>
    %5 = vector.broadcast %4 : vector<1x128xf32> to vector<32x128xf32>
    %6 = arith.addf %3, %5 : vector<32x128xf32>
    %cst_5 = arith.constant 0.000000e+00 : f32
    %7 = vector.broadcast %cst_5 : f32 to vector<32x128xf32>
    %8 = arith.maximumf %6, %7 : vector<32x128xf32>
    %9 = arith.truncf %8 : vector<32x128xf32> to vector<32x128xbf16>
    %c0_6 = arith.constant 0 : index
    %c0_7 = arith.constant 0 : index
    %10 = vector.load %arg4[%c0_6, %c0_7] : memref<128x128xbf16, #tpu.memory_space<vmem>>, vector<128x128xbf16>
    %cst_8 = arith.constant dense<0.000000e+00> : vector<32x128xf32>
    %11 = tpu.matmul %9, %10, %cst_8 {dimension_numbers = #tpu.dot_dimension_numbers<[1], [0], [0], [1], [0, 0, 1, 1], [], []>} : vector<32x128xbf16>, vector<128x128xbf16>, vector<32x128xf32> -> vector<32x128xf32>
    %c0_9 = arith.constant 0 : index
    %c0_10 = arith.constant 0 : index
    %12 = vector.load %arg5[%c0_9, %c0_10] : memref<1x128xf32, #tpu.memory_space<vmem>>, vector<1x128xf32>
    %13 = vector.broadcast %12 : vector<1x128xf32> to vector<32x128xf32>
    %14 = arith.addf %11, %13 : vector<32x128xf32>
    %c0_11 = arith.constant 0 : index
    %c0_12 = arith.constant 0 : index
    %15 = vector.load %arg6[%c0_11, %c0_12] : memref<32x128xf32, #tpu.memory_space<vmem>>, vector<32x128xf32>
    tpu.vector_store %arg6[%c0_11, %c0_12], %14 {strides = array<i32>} : memref<32x128xf32, #tpu.memory_space<vmem>>, vector<32x128xf32>,
    return
  }
  func.func @transform_0(%arg0: i32) -> (i32, i32) {
    %c0_i32 = arith.constant 0 : i32
    %c0_i32_0 = arith.constant 0 : i32
    return %arg0, %c0_i32 : i32, i32
  }
  func.func @transform_1(%arg0: i32) -> (i32, i32) {
    %c0_i32 = arith.constant 0 : i32
    %c0_i32_0 = arith.constant 0 : i32
    %c0_i32_1 = arith.constant 0 : i32
    return %c0_i32, %c0_i32_0 : i32, i32
  }
  func.func @transform_2(%arg0: i32) -> (i32, i32) {
    %c0_i32 = arith.constant 0 : i32
    %c0_i32_0 = arith.constant 0 : i32
    %c0_i32_1 = arith.constant 0 : i32
    return %c0_i32, %c0_i32_0 : i32, i32
  }
  func.func @transform_3(%arg0: i32) -> (i32, i32) {
    %c0_i32 = arith.constant 0 : i32
    %c0_i32_0 = arith.constant 0 : i32
    %c0_i32_1 = arith.constant 0 : i32
    return %c0_i32, %c0_i32_0 : i32, i32
  }
  func.func @transform_4(%arg0: i32) -> (i32, i32) {
    %c0_i32 = arith.constant 0 : i32
    %c0_i32_0 = arith.constant 0 : i32
    %c0_i32_1 = arith.constant 0 : i32
    return %c0_i32, %c0_i32_0 : i32, i32
  }
  func.func @transform_5(%arg0: i32) -> (i32, i32) {
    %c0_i32 = arith.constant 0 : i32
    %c0_i32_0 = arith.constant 0 : i32
    return %arg0, %c0_i32 : i32, i32
  }
}

</mosaic_0001>

<bundles_post_ra>
// kernel: forward.1
= control target key start
LH: loop header
LB: loop body
LE: loop exit
PB: predicated region body
PF: predicated region fallthrough
CT: control target
= control target key end

     0   :  { %10 = vsyncpa [#allocation3], 0  ;;  %s1218_s0 = inlined_call_operand.hbm [shape: f32[32,784], index: 0, kind: input, shape index: {}]   ;;  %s1219_s1 = inlined_call_operand.hbm [shape: bf16[784,128], index: 1, kind: input, shape index: {}]   ;;  %s1220_s2 = inlined_call_operand.vmem [shape: f32[1,128], index: 2, kind: input, shape index: {}]   ;;  %s1221_s3 = inlined_call_operand.hbm [shape: bf16[128,128], index: 3, kind: input, shape index: {}]   ;;  %s1222_s4 = inlined_call_operand.vmem [shape: f32[1,128], index: 4, kind: input, shape index: {}]   ;;  %s1223_s5 = inlined_call_operand.vmem [shape: f32[32,128], index: 5, kind: output, shape index: {}]  }
   0x1   :  { %11 = vsyncpa [#allocation5], 0  ;;  %s1154_s18 = smov [#allocation4]  }
   0x2   :  { %s29_s19 = sshll.u32 %s1154_s18, 4  ;;  %s30_s19 = int_to_ptr.vmem [resolvable:$true] %s29_s19 }
   0x3   :  { %s1098_s20 = scalar_lea.vmem %s30_s19, 6272  ;;  %p1103_p1 = scmp.lt.s32.totalorder %s30_s19, %s30_s19 }
   0x4   :  { %p1099_p0 = scmp.ne.s32.totalorder %s30_s19, %s1098_s20  ;;  %p1104_p2 = scmp.lt.s32.totalorder %s1098_s20, %s1098_s20 }
   0x6   :  { %p1105_p3 = por %p1104_p2, %p1103_p1 }
   0x8   :  { %p1106_p4 = pnand %p1105_p3, %p1099_p0 }
   0xa   :  { %1109 = shalt.err (!%p1106_p4)
}
   0xb   :  { %s1155_s21 = smov 64   ;;  %s1156_s22 = smov 4  }
   0xc   :  { %35 = dma.hbm_to_vmem [thread:$0]  %s1219_s1, 6272, %s30_s19, [#allocation5], %s1155_s21, %s1155_s21, %s1156_s22  }
   0xd   :  { %s1157_s25 = smov [#allocation2]  }
   0xe   :  { %s17_s26 = sshll.u32 %s1157_s25, 4  ;;  %s18_s26 = int_to_ptr.vmem [resolvable:$true] %s17_s26 }
   0xf   :  { %s1118_s27 = scalar_lea.vmem %s18_s26, 3584  ;;  %p1123_p6 = scmp.lt.s32.totalorder %s18_s26, %s18_s26 }
  0x10   :  { %p1119_p5 = scmp.ne.s32.totalorder %s18_s26, %s1118_s27  ;;  %p1124_p7 = scmp.lt.s32.totalorder %s1118_s27, %s1118_s27 }
  0x12   :  { %p1125_p8 = por %p1124_p7, %p1123_p6 }
  0x14   :  { %p1126_p9 = pnand %p1125_p8, %p1119_p5 }
  0x16   :  { %1129 = shalt.err (!%p1126_p9)
}
  0x17   :  { %s1158_s28 = smov 896   ;;  %s1159_s29 = smov 56  }
  0x18   :  { %23 = dma.hbm_to_vmem [thread:$0]  %s1218_s0, 3584, %s18_s26, [#allocation3], %s1158_s28, %s1158_s28, %s1159_s29  }
  0x19   :  { %s1160_s7 = smov [#allocation6]  }
  0x1a   :  { %s43_s8 = sshll.u32 %s1160_s7, 4  ;;  %s44_s8 = int_to_ptr.vmem [resolvable:$true] %s43_s8 }
  0x1b   :  { %s1138_s1 = scalar_lea.vmem %s44_s8, 1024  ;;  %p1143_p11 = scmp.lt.s32.totalorder %s44_s8, %s44_s8 }
  0x1c   :  { %p1139_p10 = scmp.ne.s32.totalorder %s44_s8, %s1138_s1  ;;  %p1144_p12 = scmp.lt.s32.totalorder %s1138_s1, %s1138_s1 }
  0x1e   :  { %p1145_p13 = por %p1144_p12, %p1143_p11 }
  0x20   :  { %p1146_p0 = pnand %p1145_p13, %p1139_p10 }
  0x22   :  { %1149 = shalt.err (!%p1146_p0)
}
  0x23   :  { %49 = dma.hbm_to_vmem [thread:$0]  %s1221_s3, 1024, %s44_s8, [#allocation5], %s1155_s21, %s1155_s21, %s1156_s22  }
  0x24   :  { %1150 = dma.done.wait [#allocation3], 3584  }
  0x25   :  { %1151 = vsyncadd [#allocation3], 4294963712 }
  0x26   :  { %1152 = dma.done.wait [#allocation5], 7296  }
  0x27   :  { %1153 = vsyncadd [#allocation5], 4294960000  ;;  %v1033_v0 = vld [vmem:[#allocation4 + $0x78] sm:$0xff]   ;;  %v1037_v4 = vld [vmem:[#allocation4 + $0x70] sm:$0xff]   ;;  %vm503_vm0 = vcmask 130048  }
  0x28   :  { %v1034_v1 = vld [vmem:[#allocation4 + $0x38] sm:$0xff]   ;;  %903 = vmatprep.subr.bf16.mxu0 %v1033_v0  ;;  %v1038_v5 = vld [vmem:[#allocation4 + $0x30] sm:$0xff]   ;;  %v1041_v8 = vld [vmem:[#allocation4 + $0x68] sm:$0xff]  }
  0x29   :  { %v1035_v2 = vld [vmem:[#allocation4 + $0xf8] sm:$0xff]   ;;  %904 = vmatpush3.bf16.msra.mxu0 %v1034_v1  ;;  %v1039_v6 = vld [vmem:[#allocation4 + $0xf0] sm:$0xff]   ;;  %v1042_v9 = vld [vmem:[#allocation4 + $0x28] sm:$0xff]  }
  0x2a   :  { %v1036_v3 = vld [vmem:[#allocation4 + $0xb8] sm:$0xff]   ;;  %931 = vmatprep.subr.bf16.mxu1 %v1035_v2  ;;  %905 = vmatprep.subr.bf16.mxu0 %v1037_v4  ;;  %v1040_v7 = vld [vmem:[#allocation4 + $0xb0] sm:$0xff]   ;;  %v1043_v10 = vld [vmem:[#allocation4 + $0xe8] sm:$0xff]  }
  0x2b   :  { %932 = vmatpush3.bf16.msra.mxu1 %v1036_v3  ;;  %v1044_v11 = vld [vmem:[#allocation4 + $0xa8] sm:$0xff]   ;;  %v1045_v12 = vld [vmem:[#allocation4 + $0x60] sm:$0xff]   ;;  %v1049_v16 = vld [vmem:[#allocation4 + $0x58] sm:$0xff]  }
  0x2c   :  { %933 = vmatprep.subr.bf16.mxu1 %v1039_v6  ;;  %v1046_v13 = vld [vmem:[#allocation4 + $0x20] sm:$0xff]   ;;  %v1050_v17 = vld [vmem:[#allocation4 + $0x18] sm:$0xff]   ;;  %v1053_v20 = vld [vmem:[#allocation4 + $0x50] sm:$0xff]  }
  0x2d   :  { %906 = vmatpush3.bf16.msra.mxu0 %v1038_v5  ;;  %v1047_v14 = vld [vmem:[#allocation4 + $0xe0] sm:$0xff]   ;;  %v1051_v18 = vld [vmem:[#allocation4 + $0xd8] sm:$0xff]   ;;  %v1054_v21 = vld [vmem:[#allocation4 + $0x10] sm:$0xff]  }
  0x2e   :  { %907 = vmatprep.subr.bf16.mxu0 %v1041_v8  ;;  %v1048_v15 = vld [vmem:[#allocation4 + $0xa0] sm:$0xff]   ;;  %v1052_v19 = vld [vmem:[#allocation4 + $0x98] sm:$0xff]   ;;  %v1055_v22 = vld [vmem:[#allocation4 + $0xd0] sm:$0xff]  }
  0x2f   :  { %934 = vmatpush3.bf16.msra.mxu1 %v1040_v7  ;;  %v1056_v23 = vld [vmem:[#allocation4 + $0x90] sm:$0xff]   ;;  %v1057_v24 = vld [vmem:[#allocation4 + $0x48] sm:$0xff]   ;;  %v1061_v28 = vld [vmem:[#allocation4 + $0x40] sm:$0xff]  }
  0x30   :  { %935 = vmatprep.subr.bf16.mxu1 %v1043_v10  ;;  %v1058_v25 = vld [vmem:[#allocation4 + $0x8] sm:$0xff]   ;;  %v1062_v29 = vld [vmem:[#allocation4] sm:$0xff]   ;;  %v69_v36 = vld [vmem:[#allocation2 + $0x38] sm:$0xff] }
  0x31   :  { %908 = vmatpush3.bf16.msra.mxu0 %v1042_v9  ;;  %v1059_v26 = vld [vmem:[#allocation4 + $0xc8] sm:$0xff]   ;;  %v1063_v30 = vld [vmem:[#allocation4 + $0xc0] sm:$0xff]   ;;  %v1065_v38 = vld [vmem:[#allocation4 + $0x178] sm:$0xff]  }
  0x32   :  { %909 = vmatprep.subr.bf16.mxu0 %v1045_v12  ;;  %v1060_v27 = vld [vmem:[#allocation4 + $0x88] sm:$0xff]   ;;  %v70_v32 = vld [vmem:[#allocation2 + $0x40] sm:$0xff]  ;;  %v65_v39 = vld [vmem:[#allocation2 + $0x18] sm:$0xff] }
  0x33   :  { %936 = vmatpush3.bf16.msra.mxu1 %v1044_v11  ;;  %v63_v31 = vld [vmem:[#allocation2 + $0x8] sm:$0xff]  ;;  %v1064_v34 = vld [vmem:[#allocation4 + $0x80] sm:$0xff]   ;;  %v72_v40 = vld [vmem:[#allocation2 + $0x50] sm:$0xff] }
  0x34   :  { %937 = vmatprep.subr.bf16.mxu1 %v1047_v14  ;;  %v91_v33 = vpack.c.bf16 %v70_v32, %v63_v31  ;;  %v62_v35 = vld [vmem:[#allocation2] sm:$0xff]  ;;  %v93_v41 = vpack.c.bf16 %v72_v40, %v65_v39  ;;  %v1066_v42 = vld [vmem:[#allocation4 + $0x138] sm:$0xff]   ;;  %v64_v43 = vld [vmem:[#allocation2 + $0x10] sm:$0xff] }
  0x35   :  { %910 = vmatpush3.bf16.msra.mxu0 %v1046_v13  ;;  %v90_v37 = vpack.c.bf16 %v69_v36, %v62_v35  ;;  %v71_v44 = vld [vmem:[#allocation2 + $0x48] sm:$0xff]  ;;  %v1067_v46 = vld [vmem:[#allocation4 + $0x170] sm:$0xff]   ;;  %v1071_v50 = vld [vmem:[#allocation4 + $0x160] sm:$0xff]  }
  0x36   :  { %911 = vmatprep.subr.bf16.mxu0 %v1049_v16  ;;  %542 = vmatprep.mubr.bf16.mxu0 %v91_v33  ;;  %v92_v45 = vpack.c.bf16 %v71_v44, %v64_v43  ;;  %v1068_v47 = vld [vmem:[#allocation4 + $0x130] sm:$0xff]   ;;  %v1069_v48 = vld [vmem:[#allocation4 + $0x168] sm:$0xff]   ;;  %v1072_v51 = vld [vmem:[#allocation4 + $0x120] sm:$0xff]  }
  0x37   :  { %938 = vmatpush3.bf16.msra.mxu1 %v1048_v15  ;;  %591 = vmatprep.mubr.bf16.mxu1 %v93_v41  ;;  %v1070_v49 = vld [vmem:[#allocation4 + $0x128] sm:$0xff]   ;;  %v77_v52 = vld [vmem:[#allocation2 + $0x78] sm:$0xff]  ;;  %v84_v53 = vld [vmem:[#allocation2 + $0xb0] sm:$0xff] }
  0x38   :  { %939 = vmatprep.subr.bf16.mxu1 %v1051_v18  ;;  %v1073_v54 = vld [vmem:[#allocation4 + $0x158] sm:$0xff]   ;;  %v98_v55 = vpack.c.bf16 %v84_v53, %v77_v52  ;;  %v76_v56 = vld [vmem:[#allocation2 + $0x70] sm:$0xff]  ;;  %v83_v57 = vld [vmem:[#allocation2 + $0xa8] sm:$0xff] }
  0x39   :  { %912 = vmatpush3.bf16.msra.mxu0 %v1050_v17  ;;  %v97_v58 = vpack.c.bf16 %v83_v57, %v76_v56  ;;  %v79_v59 = vld [vmem:[#allocation2 + $0x88] sm:$0xff]  ;;  %v86_v60 = vld [vmem:[#allocation2 + $0xc0] sm:$0xff]  ;;  %v85_v63 = vld [vmem:[#allocation2 + $0xb8] sm:$0xff] }
  0x3a   :  { %913 = vmatprep.subr.bf16.mxu0 %v1053_v20  ;;  %v78_v61 = vld [vmem:[#allocation2 + $0x80] sm:$0xff]  ;;  %v100_v62 = vpack.c.bf16 %v86_v60, %v79_v59  ;;  %v1074_v1 = vld [vmem:[#allocation4 + $0x118] sm:$0xff]   ;;  %v1075_v2 = vld [vmem:[#allocation4 + $0x150] sm:$0xff]  }
  0x3b   :  { %940 = vmatpush3.bf16.msra.mxu1 %v1052_v19  ;;  %v99_v0 = vpack.c.bf16 %v85_v63, %v78_v61  ;;  %v1079_v3 = vld [vmem:[#allocation4 + $0x180] sm:$0xff]   ;;  %v1076_v4 = vld [vmem:[#allocation4 + $0x110] sm:$0xff]   ;;  %v1077_v5 = vld [vmem:[#allocation4 + $0x148] sm:$0xff]  }
  0x3c   :  { %941 = vmatprep.subr.bf16.mxu1 %v1055_v22  ;;  %v67_v6 = vld [vmem:[#allocation2 + $0x28] sm:$0xff]  ;;  %v74_v7 = vld [vmem:[#allocation2 + $0x60] sm:$0xff]  ;;  %v68_v9 = vld [vmem:[#allocation2 + $0x30] sm:$0xff] }
  0x3d   :  { %914 = vmatpush3.bf16.msra.mxu0 %v1054_v21  ;;  %v95_v8 = vpack.c.bf16 %v74_v7, %v67_v6  ;;  %v75_v10 = vld [vmem:[#allocation2 + $0x68] sm:$0xff]  ;;  %v82_v11 = vld [vmem:[#allocation2 + $0xa0] sm:$0xff]  ;;  %v89_v12 = vld [vmem:[#allocation2 + $0xd8] sm:$0xff] }
  0x3e   :  { %915 = vmatprep.subr.bf16.mxu0 %v1057_v24  ;;  %v1078_v13 = vld [vmem:[#allocation4 + $0x108] sm:$0xff]   ;;  %v96_v14 = vpack.c.bf16 %v75_v10, %v68_v9  ;;  %v103_v15 = vpack.c.bf16 %v89_v12, %v82_v11  ;;  %v1080_v16 = vld [vmem:[#allocation4 + $0x140] sm:$0xff]   ;;  %v73_v19 = vld [vmem:[#allocation2 + $0x58] sm:$0xff] }
  0x3f   :  { %942 = vmatpush3.bf16.msra.mxu1 %v1056_v23  ;;  %v1081_v17 = vld [vmem:[#allocation4 + $0x100] sm:$0xff]   ;;  %v81_v20 = vld [vmem:[#allocation2 + $0x98] sm:$0xff]  ;;  %v88_v21 = vld [vmem:[#allocation2 + $0xd0] sm:$0xff] }
  0x40   :  { %943 = vmatprep.subr.bf16.mxu1 %v1059_v26  ;;  %v66_v18 = vld [vmem:[#allocation2 + $0x20] sm:$0xff]  ;;  %v102_v23 = vpack.c.bf16 %v88_v21, %v81_v20  ;;  %v80_v24 = vld [vmem:[#allocation2 + $0x90] sm:$0xff]  ;;  %v1087_v32 = vld [vmem:[#allocation6 + $0x10] sm:$0xff]  }
  0x41   :  { %916 = vmatpush3.bf16.msra.mxu0 %v1058_v25  ;;  %v94_v22 = vpack.c.bf16 %v73_v19, %v66_v18  ;;  %v87_v25 = vld [vmem:[#allocation2 + $0xc8] sm:$0xff]  ;;  %v1086_v31 = vld [vmem:[#allocation6 + $0x18] sm:$0xff]   ;;  %v1088_v33 = vld [vmem:[#allocation6 + $0x8] sm:$0xff]  }
  0x42   :  { %917 = vmatprep.subr.bf16.mxu0 %v1061_v28  ;;  %v101_v26 = vpack.c.bf16 %v87_v25, %v80_v24  ;;  %v1083_v28 = vld [vmem:[#allocation6 + $0x30] sm:$0xff]  }
  0x43   :  { %944 = vmatpush3.bf16.msra.mxu1 %v1060_v27  ;;  %v1082_v27 = vld [vmem:[#allocation6 + $0x38] sm:$0xff]  }
  0x44   :  { %945 = vmatprep.subr.bf16.mxu1 %v1063_v30  ;;  %v1085_v30 = vld [vmem:[#allocation6 + $0x20] sm:$0xff]  }
  0x45   :  { %918 = vmatpush3.bf16.msra.mxu0 %v1062_v29  ;;  %v1084_v29 = vld [vmem:[#allocation6 + $0x28] sm:$0xff]  }
  0x46   :  { %959 = vmatprep.subr.bf16.mxu0 %v1065_v38 }
  0x47   :  { %946 = vmatpush3.bf16.msra.mxu1 %v1064_v34  ;;  %v1089_v34 = vld [vmem:[#allocation6] sm:$0xff]  }
  0x48   :  { %543 = vmatmul.mubr.bf16.vlgmr.msra.gmra.mxu0 %v90_v37  ;;  %1000 = vmatprep.subr.bf16.mxu1 %v1079_v3 }
  0x49   :  { %960 = vmatpush3.bf16.msra.mxu0 %v1066_v42  ;;  %550 = vmatprep.mubr.bf16.mxu0 %v98_v55 }
  0x4a   :  { %592 = vmatmul.mubr.bf16.vlgmr.msra.gmra.mxu1 %v92_v45  ;;  %961 = vmatprep.subr.bf16.mxu0 %v1067_v46 }
  0x4b   :  { %599 = vmatprep.mubr.bf16.mxu1 %v100_v62  ;;  %1001 = vmatpush3.bf16.msra.mxu1 %v1079_v3 }
  0x4c   :  { %1006 = vmatprep.subr.bf16.mxu1 %v1082_v27 }
  0x4d   :  { %962 = vmatpush3.bf16.msra.mxu0 %v1068_v47 }
  0x4e   :  { %963 = vmatprep.subr.bf16.mxu0 %v1069_v48 }
  0x50   :  { %551 = vmatmul.mubr.bf16.gmra.mxu0 %v97_v58 }
  0x51   :  { %964 = vmatpush3.bf16.msra.mxu0 %v1070_v49  ;;  %640 = vmatprep.mubr.bf16.mxu0 %v95_v8 }
  0x52   :  { %965 = vmatprep.subr.bf16.mxu0 %v1071_v50  ;;  %600 = vmatmul.mubr.bf16.gmra.mxu1 %v99_v0 }
  0x53   :  { %1002 = vmatprep.mubr.msk.bf16.mxu1 %vm503_vm0, %v96_v14 }
  0x55   :  { %966 = vmatpush3.bf16.msra.mxu0 %v1072_v51  ;;  %v842_v51 = vld [vmem:[%s1220_s2] ss:$0 sm:$0xff] }
  0x56   :  { %967 = vmatprep.subr.bf16.mxu0 %v1073_v54 }
  0x59   :  { %968 = vmatpush3.bf16.msra.mxu0 %v1074_v1 }
  0x5a   :  { %969 = vmatprep.subr.bf16.mxu0 %v1075_v2  ;;  %1003 = vmatmul.mubr.msk.bf16.vlgmr.msra.gmra.mxu1 %vm503_vm0, %v103_v15 }
  0x5b   :  { %1007 = vmatpush3.bf16.msra.mxu1 %v1082_v27 }
  0x5c   :  { %1008 = vmatprep.subr.bf16.mxu1 %v1083_v28 }
  0x5d   :  { %970 = vmatpush3.bf16.msra.mxu0 %v1076_v4 }
  0x5e   :  { %971 = vmatprep.subr.bf16.mxu0 %v1077_v5 }
  0x5f   :  { %1009 = vmatpush3.bf16.msra.mxu1 %v1083_v28 }
  0x60   :  { %1010 = vmatprep.subr.bf16.mxu1 %v1084_v29 }
  0x61   :  { %972 = vmatpush3.bf16.msra.mxu0 %v1078_v13 }
  0x62   :  { %973 = vmatprep.subr.bf16.mxu0 %v1080_v16 }
  0x63   :  { %1011 = vmatpush3.bf16.msra.mxu1 %v1084_v29 }
  0x64   :  { %1012 = vmatprep.subr.bf16.mxu1 %v1085_v30 }
  0x65   :  { %974 = vmatpush3.bf16.msra.mxu0 %v1081_v17 }
  0x67   :  { %1013 = vmatpush3.bf16.msra.mxu1 %v1085_v30 }
  0x68   :  { %641 = vmatmul.mubr.bf16.vlgmr.msra.gmra.mxu0 %v94_v22  ;;  %1014 = vmatprep.subr.bf16.mxu1 %v1086_v31 }
  0x69   :  { %648 = vmatprep.mubr.bf16.mxu0 %v102_v23 }
  0x6b   :  { %1015 = vmatpush3.bf16.msra.mxu1 %v1086_v31 }
  0x6c   :  { %1016 = vmatprep.subr.bf16.mxu1 %v1087_v32 }
  0x6f   :  { %1017 = vmatpush3.bf16.msra.mxu1 %v1087_v32 }
  0x70   :  { %649 = vmatmul.mubr.bf16.gmra.mxu0 %v101_v26  ;;  %1018 = vmatprep.subr.bf16.mxu1 %v1088_v33 }
  0x73   :  { %1019 = vmatpush3.bf16.msra.mxu1 %v1088_v33 }
  0x74   :  { %1020 = vmatprep.subr.bf16.mxu1 %v1089_v34 }
  0x77   :  { %1021 = vmatpush3.bf16.msra.mxu1 %v1089_v34  ;;  %v894_v34 = vld [vmem:[%s1222_s4] ss:$0 sm:$0xff] }
 0x108   :  { %v919_v36 = vpop.f32.mrf.mxu0 }
 0x10a   :  { %v947_v35 = vpop.f32.mrf.mxu1  ;;  %v920_v38 = vpop.f32.mrf.mxu0 }
 0x10b   :  { %v921_v50 = vadd.f32 %v920_v38, %v919_v36 }
 0x10c   :  { %v948_v37 = vpop.f32.mrf.mxu1  ;;  %v922_v40 = vpop.f32.mrf.mxu0 }
 0x10d   :  { %v545_v54 = vadd.f32 %v921_v50, %v842_v51  ;;  %v949_v55 = vadd.f32 %v948_v37, %v947_v35 }
 0x10e   :  { %v950_v39 = vpop.f32.mrf.mxu1  ;;  %v923_v43 = vpop.f32.mrf.mxu0 }
 0x10f   :  { %v924_v56 = vadd.f32 %v923_v43, %v922_v40  ;;  %v594_v61 = vadd.f32 %v949_v55, %v545_v54 }
 0x110   :  { %v951_v41 = vpop.f32.mrf.mxu1  ;;  %v925_v44 = vpop.f32.mrf.mxu0 }
 0x111   :  { %v548_v62 = vadd.f32 %v924_v56, %v842_v51  ;;  %v952_v63 = vadd.f32 %v951_v41, %v950_v39 }
 0x112   :  { %v953_v42 = vpop.f32.mrf.mxu1  ;;  %v926_v46 = vpop.f32.mrf.mxu0 }
 0x113   :  { %v927_v59 = vadd.f32 %v926_v46, %v925_v44  ;;  %v597_v7 = vadd.f32 %v952_v63, %v548_v62 }
 0x114   :  { %v954_v45 = vpop.f32.mrf.mxu1  ;;  %v928_v48 = vpop.f32.mrf.mxu0 }
 0x115   :  { %v553_v4 = vadd.f32 %v927_v59, %v842_v51  ;;  %v955_v5 = vadd.f32 %v954_v45, %v953_v42 }
 0x116   :  { %v956_v47 = vpop.f32.mrf.mxu1  ;;  %v929_v53 = vpop.f32.mrf.mxu0 }
 0x117   :  { %v930_v8 = vadd.f32 %v929_v53, %v928_v48  ;;  %v602_v14 = vadd.f32 %v955_v5, %v553_v4 }
 0x118   :  { %v957_v49 = vpop.f32.mrf.mxu1 }
 0x119   :  { %v556_v16 = vadd.f32 %v930_v8, %v842_v51  ;;  %v958_v17 = vadd.f32 %v957_v49, %v956_v47 }
 0x11a   :  { %v1004_v52 = vpop.f32.mrf.mxu1 }
 0x11b   :  { %v605_v25 = vadd.f32 %v958_v17, %v556_v16 }
 0x11c   :  { %v691_v58 = vpop.f32.mrf.mxu1 }
 0x11e   :  { %v1005_v2 = vpop.f32.mrf.mxu1 }
 0x120   :  { %v694_v11 = vpop.f32.mrf.mxu1 }
 0x128   :  { %v975_v57 = vpop.f32.mrf.mxu0 }
 0x12a   :  { %v976_v60 = vpop.f32.mrf.mxu0 }
 0x12b   :  { %v977_v0 = vadd.f32 %v976_v60, %v975_v57 }
 0x12c   :  { %v978_v1 = vpop.f32.mrf.mxu0 }
 0x12d   :  { %v643_v3 = vadd.f32 %v977_v0, %v594_v61 }
 0x12e   :  { %v979_v6 = vpop.f32.mrf.mxu0 }
 0x12f   :  { %v980_v9 = vadd.f32 %v979_v6, %v978_v1  ;;  %v692_v12 = vadd.f32 %v691_v58, %v643_v3 }
 0x130   :  { %v981_v10 = vpop.f32.mrf.mxu0 }
 0x131   :  { %v646_v13 = vadd.f32 %v980_v9, %v597_v7  ;;  %v706_v21 = vmax.f32 %v692_v12, 0.0 }
 0x132   :  { %v982_v15 = vpop.f32.mrf.mxu0 }
 0x133   :  { %v983_v18 = vadd.f32 %v982_v15, %v981_v10  ;;  %v695_v19 = vadd.f32 %v694_v11, %v646_v13 }
 0x134   :  { %v984_v20 = vpop.f32.mrf.mxu0 }
 0x135   :  { %v651_v22 = vadd.f32 %v983_v18, %v602_v14  ;;  %v707_v23 = vmax.f32 %v695_v19, 0.0 }
 0x136   :  { %v985_v24 = vpop.f32.mrf.mxu0 }
 0x137   :  { %v710_v26 = vpack.c.bf16 %v707_v23, %v706_v21  ;;  %v986_v27 = vadd.f32 %v985_v24, %v984_v20  ;;  %v700_v28 = vadd.f32 %v1004_v52, %v651_v22 }
 0x139   :  { %v654_v29 = vadd.f32 %v986_v27, %v605_v25  ;;  %1022 = vmatprep.mubr.bf16.mxu1 %v710_v26  ;;  %v708_v31 = vmax.f32 %v700_v28, 0.0 }
 0x13b   :  { %v703_v30 = vadd.f32 %v1005_v2, %v654_v29 }
 0x13d   :  { %v709_v32 = vmax.f32 %v703_v30, 0.0 }
 0x13f   :  { %v711_v33 = vpack.c.bf16 %v709_v32, %v708_v31 }
 0x141   :  { %1023 = vmatmul.mubr.bf16.vlgmr.msra.gmra.mxu1 %v711_v33 }
 0x201   :  { %v1024_v35 = vpop.f32.mrf.mxu1 }
 0x202   :  { %v826_v36 = vadd.f32 %v1024_v35, %v894_v34 }
 0x203   :  { %v817_v37 = vpop.f32.mrf.mxu1 }
 0x204   :  { %834 = vst [vmem:[%s1223_s5 + $0x10] sm:$0xff] %v826_v36  ;;  %v818_v38 = vadd.f32 %v894_v34, %v817_v37 }
 0x205   :  { %v1025_v39 = vpop.f32.mrf.mxu1 }
 0x206   :  { %832 = vst [vmem:[%s1223_s5] sm:$0xff] %v818_v38  ;;  %v829_v40 = vadd.f32 %v1025_v39, %v894_v34 }
 0x207   :  { %v820_v41 = vpop.f32.mrf.mxu1 }
 0x208   :  { %835 = vst [vmem:[%s1223_s5 + $0x18] sm:$0xff] %v829_v40  ;;  %v821_v42 = vadd.f32 %v894_v34, %v820_v41 }
 0x20a   :  { %833 = vst [vmem:[%s1223_s5 + $0x8] sm:$0xff] %v821_v42 }
 0x20b   :  { %840 = vsyncpa [#allocation3], 1 }
 0x20c   :  { %841 = vsyncpa [#allocation5], 1 }

</bundles_post_ra>
